<compile_context>
chip_gen: v7x
topology: tpu7x:2x2x1
jax: 0.10.0
libtpu: 0.0.40
codegen_flags: <defaults>
</compile_context>

<pallas_src>
import jax
import jax.numpy as jnp
from jax.experimental import pallas as pl
from jax.experimental.pallas import tpu as pltpu


def _triplet_mlp_kernel(a_ref, p_ref, n_ref, w1_ref, b1_ref, w2_ref, b2_ref, o_ref):
    # a/p/n: (N, D) f32   w1: (D, H) f32   b1: (1, H) f32
    # w2: (H, E) f32      b2: (1, E) f32   o: (3N, E) f32
    # Fold the triplet into the M dimension and cast to bf16 in-kernel.
    x = jnp.concatenate([a_ref[...], p_ref[...], n_ref[...]], axis=0)
    x = x.astype(jnp.bfloat16)                                   # (3N, D) bf16
    w1 = w1_ref[...].astype(jnp.bfloat16)                        # (D, H) bf16

    h = jnp.dot(x, w1, preferred_element_type=jnp.float32)       # (3N, H) f32
    h = jnp.maximum(h + b1_ref[...], 0.0)                        # bias + ReLU in f32

    w2 = w2_ref[...].astype(jnp.bfloat16)                        # (H, E) bf16
    out = jnp.dot(h.astype(jnp.bfloat16), w2,
                  preferred_element_type=jnp.float32) + b2_ref[...]
    o_ref[...] = out.astype(o_ref.dtype)


def triplet_net_forward(anchor, positive, negative, params):
    """TripletNet.forward: the same embedding net applied to anchor/positive/
    negative, fused into ONE single-step Pallas kernel."""
    w1, b1, w2, b2 = params
    n = anchor.shape[0]
    d = anchor.shape[1] * anchor.shape[2] * anchor.shape[3]
    hidden = w1.shape[1]
    emb_dim = w2.shape[1]

    # Row-major flatten == torch x.view(N, -1); reshape is free (no copy).
    a = anchor.reshape(n, d)
    p = positive.reshape(n, d)
    ng = negative.reshape(n, d)

    # Kernel-visible traffic: three f32 input slabs, f32 weights/biases once,
    # f32 output once (casts happen in VMEM, not in HBM).
    bytes_accessed = (
        3 * n * d * 4
        + w1.size * 4 + b1.size * 4 + w2.size * 4 + b2.size * 4
        + 3 * n * emb_dim * 4
    )
    flops = 2 * 3 * n * (d * hidden + hidden * emb_dim)

    # No grid / no BlockSpecs: every operand is a single full-array block
    # resident in VMEM for the one and only grid step.
    out = pl.pallas_call(
        _triplet_mlp_kernel,
        out_shape=jax.ShapeDtypeStruct((3 * n, emb_dim), jnp.float32),
        cost_estimate=pl.CostEstimate(
            flops=flops, transcendentals=0, bytes_accessed=bytes_accessed
        ),
    )(a, p, ng, w1, b1, w2, b2)

    return out[:n], out[n:2 * n], out[2 * n:]


def init_params(key, in_dim, hidden_dim, emb_dim):
    k1, k2, k3, k4 = jax.random.split(key, 4)
    # Deterministic, small-scale init (synthetic weights, not a checkpoint).
    w1 = jax.random.normal(k1, (in_dim, hidden_dim), jnp.float32) * 0.02
    b1 = jax.random.normal(k2, (1, hidden_dim), jnp.float32) * 0.02
    w2 = jax.random.normal(k3, (hidden_dim, emb_dim), jnp.float32) * 0.02
    b2 = jax.random.normal(k4, (1, emb_dim), jnp.float32) * 0.02
    return (w1, b1, w2, b2)


if __name__ == "__main__":
    key = jax.random.PRNGKey(0)
    k_a, k_p, k_n, k_params = jax.random.split(key, 4)

    # Small NCHW inputs consistent with a 2D fingerprint net.
    B, C, H, W = 2, 4, 16, 16
    anchor = jax.random.normal(k_a, (B, C, H, W), jnp.float32)
    positive = jax.random.normal(k_p, (B, C, H, W), jnp.float32)
    negative = jax.random.normal(k_n, (B, C, H, W), jnp.float32)

    in_dim = C * H * W          # 1024
    hidden_dim = 128
    emb_dim = 32
    params = init_params(k_params, in_dim, hidden_dim, emb_dim)

    fwd = jax.jit(triplet_net_forward)
    emb_a, emb_p, emb_n = fwd(anchor, positive, negative, params)
    jax.block_until_ready((emb_a, emb_p, emb_n))

    # Cross-check against a plain-JAX f32 reference of the same embedding net.
    # (bf16 matmul operands -> slightly loosened tolerance.)
    def ref_embed(x):
        xf = x.reshape(x.shape[0], -1)
        h = jnp.maximum(xf @ params[0] + params[1], 0.0)
        return h @ params[2] + params[3]

    assert emb_a.shape == (B, emb_dim)
    assert emb_p.shape == (B, emb_dim)
    assert emb_n.shape == (B, emb_dim)
    assert jnp.allclose(emb_a, ref_embed(anchor), atol=2e-2, rtol=2e-2)
    assert jnp.allclose(emb_p, ref_embed(positive), atol=2e-2, rtol=2e-2)
    assert jnp.allclose(emb_n, ref_embed(negative), atol=2e-2, rtol=2e-2)

    print("KERNEL_OK")
</pallas_src>

<mosaic_0001>
module attributes {stable_mosaic.version = 11 : i64} {
  func.func @_triplet_mlp_kernel(%arg0: memref<2x1024xf32, #tpu.memory_space<vmem>>, %arg1: memref<2x1024xf32, #tpu.memory_space<vmem>>, %arg2: memref<2x1024xf32, #tpu.memory_space<vmem>>, %arg3: memref<1024x128xf32, #tpu.memory_space<vmem>>, %arg4: memref<1x128xf32, #tpu.memory_space<vmem>>, %arg5: memref<128x32xf32, #tpu.memory_space<vmem>>, %arg6: memref<1x32xf32, #tpu.memory_space<vmem>>, %arg7: memref<6x32xf32, #tpu.memory_space<vmem>>) attributes {dimension_semantics = [], scalar_prefetch = 0 : i64, scratch_operands = 0 : i64, tpu.core_type = #tpu.core_type<tc>} {
    %c0 = arith.constant 0 : index
    %c0_0 = arith.constant 0 : index
    %0 = vector.load %arg0[%c0, %c0_0] : memref<2x1024xf32, #tpu.memory_space<vmem>>, vector<2x1024xf32>
    %c0_1 = arith.constant 0 : index
    %c0_2 = arith.constant 0 : index
    %1 = vector.load %arg1[%c0_1, %c0_2] : memref<2x1024xf32, #tpu.memory_space<vmem>>, vector<2x1024xf32>
    %c0_3 = arith.constant 0 : index
    %c0_4 = arith.constant 0 : index
    %2 = vector.load %arg2[%c0_3, %c0_4] : memref<2x1024xf32, #tpu.memory_space<vmem>>, vector<2x1024xf32>
    %3 = tpu.concatenate %0, %1, %2 in 0 : vector<2x1024xf32>, vector<2x1024xf32>, vector<2x1024xf32> -> vector<6x1024xf32>
    %4 = arith.truncf %3 : vector<6x1024xf32> to vector<6x1024xbf16>
    %c0_5 = arith.constant 0 : index
    %c0_6 = arith.constant 0 : index
    %5 = vector.load %arg3[%c0_5, %c0_6] : memref<1024x128xf32, #tpu.memory_space<vmem>>, vector<1024x128xf32>
    %6 = arith.truncf %5 : vector<1024x128xf32> to vector<1024x128xbf16>
    %cst = arith.constant dense<0.000000e+00> : vector<6x128xf32>
    %7 = tpu.matmul %4, %6, %cst {dimension_numbers = #tpu.dot_dimension_numbers<[1], [0], [0], [1], [0, 0, 1, 1], [], []>} : vector<6x1024xbf16>, vector<1024x128xbf16>, vector<6x128xf32> -> vector<6x128xf32>
    %c0_7 = arith.constant 0 : index
    %c0_8 = arith.constant 0 : index
    %8 = vector.load %arg4[%c0_7, %c0_8] : memref<1x128xf32, #tpu.memory_space<vmem>>, vector<1x128xf32>
    %9 = vector.broadcast %8 : vector<1x128xf32> to vector<6x128xf32>
    %10 = arith.addf %7, %9 : vector<6x128xf32>
    %cst_9 = arith.constant 0.000000e+00 : f32
    %11 = vector.broadcast %cst_9 : f32 to vector<6x128xf32>
    %12 = arith.maximumf %10, %11 : vector<6x128xf32>
    %c0_10 = arith.constant 0 : index
    %c0_11 = arith.constant 0 : index
    %13 = vector.load %arg5[%c0_10, %c0_11] : memref<128x32xf32, #tpu.memory_space<vmem>>, vector<128x32xf32>
    %14 = arith.truncf %13 : vector<128x32xf32> to vector<128x32xbf16>
    %15 = arith.truncf %12 : vector<6x128xf32> to vector<6x128xbf16>
    %cst_12 = arith.constant dense<0.000000e+00> : vector<6x32xf32>
    %16 = tpu.matmul %15, %14, %cst_12 {dimension_numbers = #tpu.dot_dimension_numbers<[1], [0], [0], [1], [0, 0, 1, 1], [], []>} : vector<6x128xbf16>, vector<128x32xbf16>, vector<6x32xf32> -> vector<6x32xf32>
    %c0_13 = arith.constant 0 : index
    %c0_14 = arith.constant 0 : index
    %17 = vector.load %arg6[%c0_13, %c0_14] : memref<1x32xf32, #tpu.memory_space<vmem>>, vector<1x32xf32>
    %18 = vector.broadcast %17 : vector<1x32xf32> to vector<6x32xf32>
    %19 = arith.addf %16, %18 : vector<6x32xf32>
    %c0_15 = arith.constant 0 : index
    %c0_16 = arith.constant 0 : index
    %20 = vector.load %arg7[%c0_15, %c0_16] : memref<6x32xf32, #tpu.memory_space<vmem>>, vector<6x32xf32>
    tpu.vector_store %arg7[%c0_15, %c0_16], %19 {strides = array<i32>} : memref<6x32xf32, #tpu.memory_space<vmem>>, vector<6x32xf32>,
    return
  }
}

</mosaic_0001>

<bundles_post_ra>
// kernel: triplet_net_forward.1
= control target key start
LH: loop header
LB: loop body
LE: loop exit
PB: predicated region body
PF: predicated region fallthrough
CT: control target
= control target key end

     0   :  { %12 = vsyncpa [#allocation3], 0  ;;  %s799_s24 = smov [#allocation2]   ;;  %s982_s0 = inlined_call_operand.vmem [shape: f32[2,1024], index: 0, kind: input, shape index: {}]   ;;  %s983_s1 = inlined_call_operand.vmem [shape: f32[2,1024], index: 1, kind: input, shape index: {}]   ;;  %s984_s2 = inlined_call_operand.vmem [shape: f32[2,1024], index: 2, kind: input, shape index: {}]   ;;  %s985_s3 = inlined_call_operand.hbm [shape: f32[1024,128], index: 3, kind: input, shape index: {}]   ;;  %s986_s4 = inlined_call_operand.vmem [shape: f32[1,128], index: 4, kind: input, shape index: {}]   ;;  %s987_s5 = inlined_call_operand.vmem [shape: f32[128,32], index: 5, kind: input, shape index: {}]   ;;  %s988_s6 = inlined_call_operand.vmem [shape: f32[1,32], index: 6, kind: input, shape index: {}]   ;;  %s989_s7 = inlined_call_operand.vmem [shape: f32[6,32], index: 7, kind: output, shape index: {}]  }
   0x1   :  { %s24_s25 = sshll.u32 %s799_s24, 4  ;;  %s775_s28 = scalar_lea.hbm %s985_s3, 16384  ;;  %s25_s25 = int_to_ptr.vmem [resolvable:$true] %s24_s25 }
   0x2   :  { %p776_p0 = scmp.ne.s32.totalorder %s985_s3, %s775_s28  ;;  %p779_p1 = scmp.lt.u32.totalorder %s775_s28, %s985_s3 }
   0x4   :  { %p781_p2 = pnand %p779_p1, %p776_p0 }
   0x6   :  { %784 = shalt.err (!%p781_p2)
}
   0x7   :  { %s785_s10 = scalar_lea.vmem %s25_s25, 16384  ;;  %p790_p4 = scmp.lt.s32.totalorder %s25_s25, %s25_s25 }
   0x8   :  { %p786_p3 = scmp.ne.s32.totalorder %s25_s25, %s785_s10  ;;  %p791_p5 = scmp.lt.s32.totalorder %s785_s10, %s785_s10 }
   0xa   :  { %p792_p6 = por %p791_p5, %p790_p4 }
   0xc   :  { %p793_p7 = pnand %p792_p6, %p786_p3 }
   0xe   :  { %796 = shalt.err (!%p793_p7)
}
   0xf   :  { %s800_s11 = smov 128   ;;  %s801_s12 = smov 8  }
  0x10   :  { %30 = dma.hbm_to_vmem [thread:$0]  %s985_s3, 16384, %s25_s25, [#allocation3], %s800_s11, %s800_s11, %s801_s12  }
  0x11   :  { %797 = dma.done.wait [#allocation3], 16384  }
  0x12   :  { %798 = vsyncadd [#allocation3], 4294950912  ;;  %v221_v0 = vld [vmem:[#allocation2 + $0x80] sm:$0xff]  ;;  %v222_v1 = vld [vmem:[#allocation2 + $0x88] sm:$0xff]  ;;  %v802_v47 = vmov 1983009808   ;;  %v53_v49 = vlaneseq }
  0x13   :  { %v253_v2 = vld [vmem:[#allocation2 + $0x180] sm:$0xff]  ;;  %v341_v3 = vpack.c.bf16 %v222_v1, %v221_v0  ;;  %v254_v4 = vld [vmem:[#allocation2 + $0x188] sm:$0xff]  ;;  %v223_v11 = vld [vmem:[#allocation2 + $0x90] sm:$0xff]  ;;  %v51_v48 = vunpack.c.l.s4 %v802_v47  ;;  %vm179_vm0 = vcmask 1041408   ;;  %vm188_vm1 = vcmask 1043456  }
  0x14   :  { %v205_v5 = vld [vmem:[#allocation2] sm:$0xff]  ;;  %v206_v6 = vld [vmem:[#allocation2 + $0x8] sm:$0xff]  ;;  %v357_v7 = vpack.c.bf16 %v254_v4, %v253_v2  ;;  %v224_v13 = vld [vmem:[#allocation2 + $0x98] sm:$0xff]  ;;  %v54_v0 = vshrl.u32 %v53_v49, 7  ;;  %vm804_vm2 = vmmov 0   ;;  %vm637_vm3 = vcmask 259072  }
  0x15   :  { %v333_v8 = vpack.c.bf16 %v206_v6, %v205_v5  ;;  %v237_v9 = vld [vmem:[#allocation2 + $0x100] sm:$0xff]  ;;  %v238_v10 = vld [vmem:[#allocation2 + $0x108] sm:$0xff]  ;;  %646 = vmatprep.subr.bf16.mxu0 %v341_v3  ;;  %v255_v14 = vld [vmem:[#allocation2 + $0x190] sm:$0xff]  ;;  %v342_v16 = vpack.c.bf16 %v224_v13, %v223_v11  ;;  %v52_v63 = vunpack.c.0.s8 %v51_v48 }
  0x16   :  { %v349_v12 = vpack.c.bf16 %v238_v10, %v237_v9  ;;  %v256_v15 = vld [vmem:[#allocation2 + $0x198] sm:$0xff]  ;;  %668 = vmatprep.subr.bf16.mxu1 %v357_v7  ;;  %v207_v18 = vld [vmem:[#allocation2 + $0x10] sm:$0xff]  ;;  %v225_v23 = vld [vmem:[#allocation2 + $0xa0] sm:$0xff] }
  0x17   :  { %647 = vmatpush3.bf16.msra.mxu0 %v333_v8  ;;  %v358_v17 = vpack.c.bf16 %v256_v15, %v255_v14  ;;  %v208_v19 = vld [vmem:[#allocation2 + $0x18] sm:$0xff]  ;;  %v239_v20 = vld [vmem:[#allocation2 + $0x110] sm:$0xff]  ;;  %v226_v24 = vld [vmem:[#allocation2 + $0xa8] sm:$0xff] }
  0x18   :  { %669 = vmatpush3.bf16.msra.mxu1 %v349_v12  ;;  %v334_v21 = vpack.c.bf16 %v208_v19, %v207_v18  ;;  %v240_v22 = vld [vmem:[#allocation2 + $0x118] sm:$0xff]  ;;  %648 = vmatprep.subr.bf16.mxu0 %v342_v16  ;;  %v343_v26 = vpack.c.bf16 %v226_v24, %v225_v23  ;;  %v257_v27 = vld [vmem:[#allocation2 + $0x1a0] sm:$0xff]  ;;  %v258_v28 = vld [vmem:[#allocation2 + $0x1a8] sm:$0xff] }
  0x19   :  { %670 = vmatprep.subr.bf16.mxu1 %v358_v17  ;;  %v350_v25 = vpack.c.bf16 %v240_v22, %v239_v20  ;;  %v209_v29 = vld [vmem:[#allocation2 + $0x20] sm:$0xff]  ;;  %v359_v30 = vpack.c.bf16 %v258_v28, %v257_v27  ;;  %v210_v31 = vld [vmem:[#allocation2 + $0x28] sm:$0xff]  ;;  %v227_v35 = vld [vmem:[#allocation2 + $0xb0] sm:$0xff]  ;;  %v857_v17 = vsub.s32 %v52_v63, %v54_v0 }
  0x1a   :  { %v241_v32 = vld [vmem:[#allocation2 + $0x120] sm:$0xff]  ;;  %v242_v33 = vld [vmem:[#allocation2 + $0x128] sm:$0xff]  ;;  %v335_v34 = vpack.c.bf16 %v210_v31, %v209_v29  ;;  %v228_v36 = vld [vmem:[#allocation2 + $0xb8] sm:$0xff] }
  0x1b   :  { %649 = vmatpush3.bf16.msra.mxu0 %v334_v21  ;;  %v259_v37 = vld [vmem:[#allocation2 + $0x1b0] sm:$0xff]  ;;  %v351_v38 = vpack.c.bf16 %v242_v33, %v241_v32  ;;  %v344_v39 = vpack.c.bf16 %v228_v36, %v227_v35  ;;  %v260_v40 = vld [vmem:[#allocation2 + $0x1b8] sm:$0xff]  ;;  %v229_v46 = vld [vmem:[#allocation2 + $0xc0] sm:$0xff] }
  0x1c   :  { %671 = vmatpush3.bf16.msra.mxu1 %v350_v25  ;;  %650 = vmatprep.subr.bf16.mxu0 %v343_v26  ;;  %v211_v41 = vld [vmem:[#allocation2 + $0x30] sm:$0xff]  ;;  %v212_v42 = vld [vmem:[#allocation2 + $0x38] sm:$0xff]  ;;  %v360_v43 = vpack.c.bf16 %v260_v40, %v259_v37  ;;  %v230_v50 = vld [vmem:[#allocation2 + $0xc8] sm:$0xff] }
  0x1d   :  { %672 = vmatprep.subr.bf16.mxu1 %v359_v30  ;;  %v243_v44 = vld [vmem:[#allocation2 + $0x130] sm:$0xff]  ;;  %v244_v45 = vld [vmem:[#allocation2 + $0x138] sm:$0xff]  ;;  %v261_v51 = vld [vmem:[#allocation2 + $0x1c0] sm:$0xff]  ;;  %v336_v53 = vpack.c.bf16 %v212_v42, %v211_v41  ;;  %v345_v55 = vpack.c.bf16 %v230_v50, %v229_v46 }
  0x1e   :  { %v262_v52 = vld [vmem:[#allocation2 + $0x1c8] sm:$0xff]  ;;  %v352_v54 = vpack.c.bf16 %v244_v45, %v243_v44  ;;  %v213_v56 = vld [vmem:[#allocation2 + $0x40] sm:$0xff]  ;;  %v231_v61 = vld [vmem:[#allocation2 + $0xd0] sm:$0xff] }
  0x1f   :  { %651 = vmatpush3.bf16.msra.mxu0 %v335_v34  ;;  %v214_v57 = vld [vmem:[#allocation2 + $0x48] sm:$0xff]  ;;  %v245_v58 = vld [vmem:[#allocation2 + $0x140] sm:$0xff]  ;;  %v361_v59 = vpack.c.bf16 %v262_v52, %v261_v51  ;;  %v232_v62 = vld [vmem:[#allocation2 + $0xd8] sm:$0xff] }
  0x20   :  { %673 = vmatpush3.bf16.msra.mxu1 %v351_v38  ;;  %652 = vmatprep.subr.bf16.mxu0 %v344_v39  ;;  %v246_v60 = vld [vmem:[#allocation2 + $0x148] sm:$0xff]  ;;  %v263_v1 = vld [vmem:[#allocation2 + $0x1d0] sm:$0xff]  ;;  %v264_v2 = vld [vmem:[#allocation2 + $0x1d8] sm:$0xff]  ;;  %v337_v4 = vpack.c.bf16 %v214_v57, %v213_v56  ;;  %v346_v9 = vpack.c.bf16 %v232_v62, %v231_v61 }
  0x21   :  { %674 = vmatprep.subr.bf16.mxu1 %v360_v43  ;;  %v215_v3 = vld [vmem:[#allocation2 + $0x50] sm:$0xff]  ;;  %v216_v5 = vld [vmem:[#allocation2 + $0x58] sm:$0xff]  ;;  %v353_v8 = vpack.c.bf16 %v246_v60, %v245_v58  ;;  %v233_v10 = vld [vmem:[#allocation2 + $0xe0] sm:$0xff]  ;;  %v362_v13 = vpack.c.bf16 %v264_v2, %v263_v1 }
  0x22   :  { %v247_v6 = vld [vmem:[#allocation2 + $0x150] sm:$0xff]  ;;  %v248_v7 = vld [vmem:[#allocation2 + $0x158] sm:$0xff]  ;;  %v234_v11 = vld [vmem:[#allocation2 + $0xe8] sm:$0xff]  ;;  %v338_v20 = vpack.c.bf16 %v216_v5, %v215_v3 }
  0x23   :  { %653 = vmatpush3.bf16.msra.mxu0 %v336_v53  ;;  %v265_v12 = vld [vmem:[#allocation2 + $0x1e0] sm:$0xff]  ;;  %v266_v14 = vld [vmem:[#allocation2 + $0x1e8] sm:$0xff]  ;;  %v354_v21 = vpack.c.bf16 %v248_v7, %v247_v6  ;;  %v235_v22 = vld [vmem:[#allocation2 + $0xf0] sm:$0xff]  ;;  %v347_v25 = vpack.c.bf16 %v234_v11, %v233_v10 }
  0x24   :  { %675 = vmatpush3.bf16.msra.mxu1 %v352_v54  ;;  %654 = vmatprep.subr.bf16.mxu0 %v345_v55  ;;  %v217_v15 = vld [vmem:[#allocation2 + $0x60] sm:$0xff]  ;;  %v218_v16 = vld [vmem:[#allocation2 + $0x68] sm:$0xff]  ;;  %v236_v23 = vld [vmem:[#allocation2 + $0xf8] sm:$0xff]  ;;  %v363_v26 = vpack.c.bf16 %v266_v14, %v265_v12 }
  0x25   :  { %676 = vmatprep.subr.bf16.mxu1 %v361_v59  ;;  %v249_v18 = vld [vmem:[#allocation2 + $0x160] sm:$0xff]  ;;  %v250_v19 = vld [vmem:[#allocation2 + $0x168] sm:$0xff]  ;;  %v267_v24 = vld [vmem:[#allocation2 + $0x1f0] sm:$0xff]  ;;  %v339_v27 = vpack.c.bf16 %v218_v16, %v217_v15  ;;  %v348_v36 = vpack.c.bf16 %v236_v23, %v235_v22 }
  0x26   :  { %v268_v28 = vld [vmem:[#allocation2 + $0x1f8] sm:$0xff]  ;;  %v41_v29 = vld [vmem:[%s982_s0] sm:$0xff]  ;;  %v355_v31 = vpack.c.bf16 %v250_v19, %v249_v18  ;;  %v219_v41 = vld [vmem:[#allocation2 + $0x70] sm:$0xff] }
  0x27   :  { %655 = vmatpush3.bf16.msra.mxu0 %v337_v4  ;;  %v43_v30 = vld [vmem:[%s983_s1] sm:$0xff]  ;;  %v56_v33 = vrot.slane %v41_v29, %v857_v17  ;;  %v49_v35 = vcombine.high %v41_v29, %v41_v29  ;;  %v364_v40 = vpack.c.bf16 %v268_v28, %v267_v24  ;;  %v220_v42 = vld [vmem:[#allocation2 + $0x78] sm:$0xff]  ;;  %v251_v46 = vld [vmem:[#allocation2 + $0x170] sm:$0xff] }
  0x28   :  { %677 = vmatpush3.bf16.msra.mxu1 %v353_v8  ;;  %656 = vmatprep.subr.bf16.mxu0 %v346_v9  ;;  %v45_v32 = vld [vmem:[%s984_s2] sm:$0xff]  ;;  %v93_v34 = vcombine.low %v43_v30, %v43_v30  ;;  %v107_v38 = vrot.slane %v43_v30, %v857_v17  ;;  %v252_v47 = vld [vmem:[#allocation2 + $0x178] sm:$0xff]  ;;  %v340_v56 = vpack.c.bf16 %v220_v42, %v219_v41  ;;  %v286_v58 = vld [vmem:[#allocation2 + $0x288] sm:$0xff] }
  0x29   :  { %678 = vmatprep.subr.bf16.mxu1 %v362_v13  ;;  %v144_v37 = vrot.slane %v45_v32, %v857_v17  ;;  %v137_v39 = vcombine.high %v45_v32, %v45_v32  ;;  %v64_v43 = vcombine.high %v56_v33, %v56_v33  ;;  %v63_v45 = vrot.slane %v49_v35, %v857_v17  ;;  %v285_v55 = vld [vmem:[#allocation2 + $0x280] sm:$0xff]  ;;  %v318_v60 = vld [vmem:[#allocation2 + $0x388] sm:$0xff]  ;;  %v287_v12 = vld [vmem:[#allocation2 + $0x290] sm:$0xff] }
  0x2a   :  { %v100_v44 = vrot.slane %v93_v34, %v857_v17  ;;  %v109_v49 = vcombine.high %v107_v38, %v107_v38  ;;  %v317_v59 = vld [vmem:[#allocation2 + $0x380] sm:$0xff]  ;;  %v356_v61 = vpack.c.bf16 %v252_v47, %v251_v46  ;;  %v270_v5 = vld [vmem:[#allocation2 + $0x208] sm:$0xff]  ;;  %v373_v9 = vpack.c.bf16 %v286_v58, %v285_v55  ;;  %v288_v13 = vld [vmem:[#allocation2 + $0x298] sm:$0xff] }
  0x2b   :  { %657 = vmatpush3.bf16.msra.mxu0 %v338_v20  ;;  %v152_v48 = vcombine.low %v144_v37, %v144_v37  ;;  %v151_v50 = vrot.slane %v137_v39, %v857_v17  ;;  %v65_v52 = vcombine.high %v63_v45, %v63_v45  ;;  %v182_v54 = vsel %vm179_vm0, %v63_v45, %v107_v38  ;;  %v269_v4 = vld [vmem:[#allocation2 + $0x200] sm:$0xff]  ;;  %v302_v11 = vld [vmem:[#allocation2 + $0x308] sm:$0xff]  ;;  %v319_v15 = vld [vmem:[#allocation2 + $0x390] sm:$0xff] }
  0x2c   :  { %679 = vmatpush3.bf16.msra.mxu1 %v354_v21  ;;  %658 = vmatprep.subr.bf16.mxu0 %v347_v25  ;;  %v108_v51 = vcombine.high %v100_v44, %v100_v44  ;;  %v180_v53 = vsel %vm179_vm0, %v56_v33, %v100_v44  ;;  %v301_v6 = vld [vmem:[#allocation2 + $0x300] sm:$0xff]  ;;  %v389_v10 = vpack.c.bf16 %v318_v60, %v317_v59  ;;  %v320_v16 = vld [vmem:[#allocation2 + $0x398] sm:$0xff]  ;;  %v271_v22 = vld [vmem:[#allocation2 + $0x210] sm:$0xff] }
  0x2d   :  { %680 = vmatprep.subr.bf16.mxu1 %v363_v26  ;;  %v153_v57 = vcombine.low %v151_v50, %v151_v50  ;;  %v183_v63 = vsel %vm179_vm0, %v65_v52, %v109_v49  ;;  %v189_v0 = vsel %vm188_vm1, %v180_v53, %v152_v48  ;;  %v365_v19 = vpack.c.bf16 %v270_v5, %v269_v4  ;;  %v272_v23 = vld [vmem:[#allocation2 + $0x218] sm:$0xff]  ;;  %v303_v24 = vld [vmem:[#allocation2 + $0x310] sm:$0xff]  ;;  %v290_v28 = vld [vmem:[#allocation2 + $0x2a8] sm:$0xff] }
  0x2e   :  { %v181_v62 = vsel %vm179_vm0, %v64_v43, %v108_v51  ;;  %v192_v2 = vsel %vm188_vm1, %v183_v63, %v151_v50  ;;  %v197_v14 = vpack.c.bf16 %v189_v0, %v189_v0  ;;  %v381_v20 = vpack.c.bf16 %v302_v11, %v301_v6  ;;  %v304_v26 = vld [vmem:[#allocation2 + $0x318] sm:$0xff]  ;;  %v321_v29 = vld [vmem:[#allocation2 + $0x3a0] sm:$0xff]  ;;  %v322_v30 = vld [vmem:[#allocation2 + $0x3a8] sm:$0xff] }
  0x2f   :  { %659 = vmatpush3.bf16.msra.mxu0 %v339_v27  ;;  %v190_v1 = vsel %vm188_vm1, %v181_v62, %v144_v37  ;;  %v191_v3 = vsel %vm188_vm1, %v182_v54, %v153_v57  ;;  %v200_v8 = vpack.c.bf16 %v192_v2, %v192_v2  ;;  %v374_v21 = vpack.c.bf16 %v288_v13, %v287_v12  ;;  %v289_v27 = vld [vmem:[#allocation2 + $0x2a0] sm:$0xff]  ;;  %v274_v35 = vld [vmem:[#allocation2 + $0x228] sm:$0xff]  ;;  %v291_v39 = vld [vmem:[#allocation2 + $0x2b0] sm:$0xff] }
  0x30   :  { %681 = vmatpush3.bf16.msra.mxu1 %v355_v31  ;;  %660 = vmatprep.subr.bf16.mxu0 %v348_v36  ;;  %v198_v7 = vpack.c.bf16 %v190_v1, %v190_v1  ;;  %v199_v18 = vpack.c.bf16 %v191_v3, %v191_v3  ;;  %v390_v25 = vpack.c.bf16 %v320_v16, %v319_v15  ;;  %v273_v34 = vld [vmem:[#allocation2 + $0x220] sm:$0xff]  ;;  %v306_v38 = vld [vmem:[#allocation2 + $0x328] sm:$0xff]  ;;  %v323_v41 = vld [vmem:[#allocation2 + $0x3b0] sm:$0xff] }
  0x31   :  { %682 = vmatprep.subr.bf16.mxu1 %v364_v40  ;;  %476 = vmatprep.mubr.bf16.mxu1 %v200_v8  ;;  %v366_v31 = vpack.c.bf16 %v272_v23, %v271_v22  ;;  %v382_v32 = vpack.c.bf16 %v304_v26, %v303_v24  ;;  %v375_v33 = vpack.c.bf16 %v290_v28, %v289_v27  ;;  %v305_v36 = vld [vmem:[#allocation2 + $0x320] sm:$0xff]  ;;  %v292_v40 = vld [vmem:[#allocation2 + $0x2b8] sm:$0xff]  ;;  %v275_v44 = vld [vmem:[#allocation2 + $0x230] sm:$0xff] }
  0x32   :  { %436 = vmatprep.mubr.bf16.mxu0 %v198_v7  ;;  %v391_v37 = vpack.c.bf16 %v322_v30, %v321_v29  ;;  %v324_v42 = vld [vmem:[#allocation2 + $0x3b8] sm:$0xff]  ;;  %v367_v43 = vpack.c.bf16 %v274_v35, %v273_v34  ;;  %v383_v45 = vpack.c.bf16 %v306_v38, %v305_v36  ;;  %v376_v46 = vpack.c.bf16 %v292_v40, %v291_v39  ;;  %v307_v48 = vld [vmem:[#allocation2 + $0x330] sm:$0xff]  ;;  %v293_v51 = vld [vmem:[#allocation2 + $0x2c0] sm:$0xff] }
  0x33   :  { %661 = vmatpush3.bf16.msra.mxu0 %v340_v56  ;;  %v276_v47 = vld [vmem:[#allocation2 + $0x238] sm:$0xff]  ;;  %v392_v50 = vpack.c.bf16 %v324_v42, %v323_v41  ;;  %v294_v52 = vld [vmem:[#allocation2 + $0x2c8] sm:$0xff]  ;;  %v325_v53 = vld [vmem:[#allocation2 + $0x3c0] sm:$0xff] }
  0x34   :  { %683 = vmatpush3.bf16.msra.mxu1 %v356_v61  ;;  %690 = vmatprep.subr.bf16.mxu0 %v373_v9  ;;  %v308_v49 = vld [vmem:[#allocation2 + $0x338] sm:$0xff]  ;;  %v326_v54 = vld [vmem:[#allocation2 + $0x3c8] sm:$0xff]  ;;  %v368_v56 = vpack.c.bf16 %v276_v47, %v275_v44  ;;  %v377_v62 = vpack.c.bf16 %v294_v52, %v293_v51  ;;  %v277_v63 = vld [vmem:[#allocation2 + $0x240] sm:$0xff] }
  0x35   :  { %712 = vmatprep.subr.bf16.mxu1 %v389_v10  ;;  %v42_v55 = vld [vmem:[%s982_s0 + $0x8] sm:$0xff]  ;;  %v384_v57 = vpack.c.bf16 %v308_v49, %v307_v48  ;;  %v309_v1 = vld [vmem:[#allocation2 + $0x340] sm:$0xff]  ;;  %v393_v4 = vpack.c.bf16 %v326_v54, %v325_v53  ;;  %v295_v6 = vld [vmem:[#allocation2 + $0x2d0] sm:$0xff] }
  0x36   :  { %437 = vmatmul.mubr.bf16.vlgmr.msra.gmra.mrb[0].mxu0 %v197_v14  ;;  %v44_v58 = vld [vmem:[%s983_s1 + $0x8] sm:$0xff]  ;;  %v892_v60 = vrot.slane %v42_v55, %v857_v17  ;;  %v66_v61 = vcombine.high %v42_v55, %v42_v55  ;;  %v296_v7 = vld [vmem:[#allocation2 + $0x2d8] sm:$0xff]  ;;  %v327_v10 = vld [vmem:[#allocation2 + $0x3d0] sm:$0xff] }
  0x37   :  { %477 = vmatmul.mubr.bf16.vlgmr.msra.gmra.mrb[0].mxu1 %v199_v18  ;;  %691 = vmatpush3.bf16.msra.mxu0 %v365_v19  ;;  %v46_v59 = vld [vmem:[%s984_s2 + $0x8] sm:$0xff]  ;;  %v110_v2 = vcombine.low %v44_v58, %v44_v58  ;;  %v895_v3 = vrot.slane %v44_v58, %v857_v17  ;;  %v328_v11 = vld [vmem:[#allocation2 + $0x3d8] sm:$0xff]  ;;  %v279_v22 = vld [vmem:[#allocation2 + $0x250] sm:$0xff] }
  0x38   :  { %713 = vmatpush3.bf16.msra.mxu1 %v381_v20  ;;  %692 = vmatprep.subr.bf16.mxu0 %v374_v21  ;;  %v278_v0 = vld [vmem:[#allocation2 + $0x248] sm:$0xff]  ;;  %v898_v8 = vrot.slane %v66_v61, %v857_v17  ;;  %v154_v9 = vcombine.high %v46_v59, %v46_v59  ;;  %v81_v12 = vcombine.high %v892_v60, %v892_v60  ;;  %v280_v23 = vld [vmem:[#allocation2 + $0x258] sm:$0xff]  ;;  %v311_v24 = vld [vmem:[#allocation2 + $0x350] sm:$0xff] }
  0x39   :  { %714 = vmatprep.subr.bf16.mxu1 %v390_v25  ;;  %v310_v5 = vld [vmem:[#allocation2 + $0x348] sm:$0xff]  ;;  %v117_v13 = vrot.slane %v110_v2, %v857_v17  ;;  %v126_v14 = vcombine.high %v895_v3, %v895_v3  ;;  %v369_v15 = vpack.c.bf16 %v278_v0, %v277_v63  ;;  %v161_v16 = vrot.slane %v46_v59, %v857_v17  ;;  %v312_v27 = vld [vmem:[#allocation2 + $0x358] sm:$0xff]  ;;  %v297_v28 = vld [vmem:[#allocation2 + $0x2e0] sm:$0xff] }
  0x3a   :  { %v82_v18 = vcombine.high %v898_v8, %v898_v8  ;;  %v909_v19 = vrot.slane %v154_v9, %v857_v17  ;;  %v385_v20 = vpack.c.bf16 %v310_v5, %v309_v1  ;;  %v378_v21 = vpack.c.bf16 %v296_v7, %v295_v6  ;;  %v298_v29 = vld [vmem:[#allocation2 + $0x2e8] sm:$0xff]  ;;  %v281_v35 = vld [vmem:[#allocation2 + $0x260] sm:$0xff]  ;;  %v331_v47 = vld [vmem:[#allocation2 + $0x3f0] sm:$0xff] }
  0x3b   :  { %693 = vmatpush3.bf16.msra.mxu0 %v366_v31  ;;  %v125_v25 = vcombine.high %v117_v13, %v117_v13  ;;  %v394_v26 = vpack.c.bf16 %v328_v11, %v327_v10  ;;  %v329_v31 = vld [vmem:[#allocation2 + $0x3e0] sm:$0xff]  ;;  %v370_v34 = vpack.c.bf16 %v280_v23, %v279_v22  ;;  %v386_v38 = vpack.c.bf16 %v312_v27, %v311_v24  ;;  %v282_v40 = vld [vmem:[#allocation2 + $0x268] sm:$0xff]  ;;  %v332_v48 = vld [vmem:[#allocation2 + $0x3f8] sm:$0xff] }
  0x3c   :  { %715 = vmatpush3.bf16.msra.mxu1 %v382_v32  ;;  %694 = vmatprep.subr.bf16.mxu0 %v375_v33  ;;  %v187_v30 = vsel %vm179_vm0, %v82_v18, %v126_v14  ;;  %v330_v32 = vld [vmem:[#allocation2 + $0x3e8] sm:$0xff]  ;;  %v379_v39 = vpack.c.bf16 %v298_v29, %v297_v28  ;;  %v313_v41 = vld [vmem:[#allocation2 + $0x360] sm:$0xff]  ;;  %v371_v49 = vpack.c.bf16 %v282_v40, %v281_v35  ;;  %v283_v53 = vld [vmem:[#allocation2 + $0x270] sm:$0xff]  ;;  %v803_v6 = vmov 0.0  }
  0x3d   :  { %716 = vmatprep.subr.bf16.mxu1 %v391_v37  ;;  %v185_v17 = vsel %vm179_vm0, %v81_v12, %v125_v25  ;;  %v196_v33 = vsel %vm188_vm1, %v187_v30, %v909_v19  ;;  %v314_v42 = vld [vmem:[#allocation2 + $0x368] sm:$0xff]  ;;  %v395_v44 = vpack.c.bf16 %v330_v32, %v329_v31  ;;  %v169_v51 = vcombine.low %v161_v16, %v161_v16  ;;  %v284_v54 = vld [vmem:[#allocation2 + $0x278] sm:$0xff]  ;;  %v315_v58 = vld [vmem:[#allocation2 + $0x370] sm:$0xff] }
  0x3e   :  { %v194_v36 = vsel %vm188_vm1, %v185_v17, %v161_v16  ;;  %v204_v37 = vpack.c.bf16 %v196_v33, %v196_v33  ;;  %v170_v55 = vcombine.low %v909_v19, %v909_v19  ;;  %v316_v59 = vld [vmem:[#allocation2 + $0x378] sm:$0xff]  ;;  %v186_v61 = vsel %vm179_vm0, %v898_v8, %v895_v3  ;;  %v565_v3 = vld [vmem:[%s987_s5] sm:$0xff]  ;;  %v567_v5 = vld [vmem:[%s987_s5 + $0x10] sm:$0xff] }
  0x3f   :  { %695 = vmatpush3.bf16.msra.mxu0 %v367_v43  ;;  %v202_v43 = vpack.c.bf16 %v194_v36, %v194_v36  ;;  %v388_v0 = vpack.c.bf16 %v316_v59, %v315_v58  ;;  %v568_v8 = vld [vmem:[%s987_s5 + $0x18] sm:$0xff]  ;;  %v569_v10 = vld [vmem:[%s987_s5 + $0x20] sm:$0xff]  ;;  %v570_v11 = vld [vmem:[%s987_s5 + $0x28] sm:$0xff] }
  0x40   :  { %717 = vmatpush3.bf16.msra.mxu1 %v383_v45  ;;  %696 = vmatprep.subr.bf16.mxu0 %v376_v46  ;;  %v299_v45 = vld [vmem:[#allocation2 + $0x2f0] sm:$0xff]  ;;  %v300_v46 = vld [vmem:[#allocation2 + $0x2f8] sm:$0xff]  ;;  %v195_v1 = vsel %vm188_vm1, %v186_v61, %v170_v55  ;;  %v582_v9 = vpack.c.bf16 %v568_v8, %v567_v5  ;;  %v583_v12 = vpack.c.bf16 %v570_v11, %v569_v10  ;;  %v573_v16 = vld [vmem:[%s987_s5 + $0x40] sm:$0xff] }
  0x41   :  { %718 = vmatprep.subr.bf16.mxu1 %v392_v50  ;;  %556 = vmatprep.mubr.bf16.mxu1 %v204_v37  ;;  %v387_v50 = vpack.c.bf16 %v314_v42, %v313_v41  ;;  %v380_v52 = vpack.c.bf16 %v300_v46, %v299_v45  ;;  %v572_v14 = vld [vmem:[%s987_s5 + $0x38] sm:$0xff]  ;;  %v574_v18 = vld [vmem:[%s987_s5 + $0x48] sm:$0xff]  ;;  %v577_v23 = vld [vmem:[%s987_s5 + $0x60] sm:$0xff] }
  0x42   :  { %516 = vmatprep.mubr.bf16.mxu0 %v202_v43  ;;  %v585_v19 = vpack.c.bf16 %v574_v18, %v573_v16  ;;  %v578_v24 = vld [vmem:[%s987_s5 + $0x68] sm:$0xff]  ;;  %v580_v27 = vld [vmem:[%s987_s5 + $0x78] sm:$0xff]  ;;  %v644_v31 = vld [vmem:[%s986_s4] ss:$0 sm:$0xff] }
  0x43   :  { %697 = vmatpush3.bf16.msra.mxu0 %v368_v56  ;;  %v184_v56 = vsel %vm179_vm0, %v892_v60, %v117_v13  ;;  %v203_v60 = vpack.c.bf16 %v195_v1, %v195_v1  ;;  %v571_v13 = vld [vmem:[%s987_s5 + $0x30] sm:$0xff]  ;;  %v587_v25 = vpack.c.bf16 %v578_v24, %v577_v23  ;;  %v645_v55 = vld [vmem:[%s988_s6] ss:$0 sm:$0xff] }
  0x44   :  { %719 = vmatpush3.bf16.msra.mxu1 %v384_v57  ;;  %698 = vmatprep.subr.bf16.mxu0 %v377_v62  ;;  %v396_v57 = vpack.c.bf16 %v332_v48, %v331_v47  ;;  %v372_v62 = vpack.c.bf16 %v284_v54, %v283_v53  ;;  %v193_v63 = vsel %vm188_vm1, %v184_v56, %v169_v51 }
  0x45   :  { %720 = vmatprep.subr.bf16.mxu1 %v393_v4  ;;  %v201_v2 = vpack.c.bf16 %v193_v63, %v193_v63  ;;  %v566_v4 = vld [vmem:[%s987_s5 + $0x8] sm:$0xff] }
  0x46   :  { %v581_v7 = vpack.c.bf16 %v566_v4, %v565_v3 }
  0x47   :  { %699 = vmatpush3.bf16.msra.mxu0 %v369_v15  ;;  %v584_v15 = vpack.c.bf16 %v572_v14, %v571_v13 }
  0x48   :  { %721 = vmatpush3.bf16.msra.mxu1 %v385_v20  ;;  %700 = vmatprep.subr.bf16.mxu0 %v378_v21  ;;  %v575_v20 = vld [vmem:[%s987_s5 + $0x50] sm:$0xff]  ;;  %v576_v21 = vld [vmem:[%s987_s5 + $0x58] sm:$0xff] }
  0x49   :  { %722 = vmatprep.subr.bf16.mxu1 %v394_v26  ;;  %v586_v22 = vpack.c.bf16 %v576_v21, %v575_v20  ;;  %v579_v26 = vld [vmem:[%s987_s5 + $0x70] sm:$0xff] }
  0x4a   :  { %v588_v28 = vpack.c.bf16 %v580_v27, %v579_v26 }
  0x4b   :  { %701 = vmatpush3.bf16.msra.mxu0 %v370_v34 }
  0x4c   :  { %723 = vmatpush3.bf16.msra.mxu1 %v386_v38  ;;  %702 = vmatprep.subr.bf16.mxu0 %v379_v39 }
  0x4d   :  { %724 = vmatprep.subr.bf16.mxu1 %v395_v44 }
  0x4f   :  { %703 = vmatpush3.bf16.msra.mxu0 %v371_v49 }
  0x50   :  { %725 = vmatpush3.bf16.msra.mxu1 %v387_v50  ;;  %704 = vmatprep.subr.bf16.mxu0 %v380_v52 }
  0x51   :  { %726 = vmatprep.subr.bf16.mxu1 %v396_v57 }
  0x53   :  { %705 = vmatpush3.bf16.msra.mxu0 %v372_v62 }
  0x54   :  { %727 = vmatpush3.bf16.msra.mxu1 %v388_v0  ;;  %743 = vmatprep.subr.bf16.mxu0 %v803_v6 }
  0x56   :  { %517 = vmatmul.mubr.bf16.vlgmr.msra.gmra.mrb[4].mxu0 %v201_v2 }
  0x57   :  { %557 = vmatmul.mubr.bf16.vlgmr.msra.gmra.mrb[4].mxu1 %v203_v60  ;;  %744 = vmatpush3.bf16.msra.mxu0 %v581_v7 }
  0x58   :  { %745 = vmatprep.subr.bf16.mxu0 %v803_v6  ;;  %759 = vmatprep.mubr.msk.bf16.mxu0 %vm804_vm2, %v803_v6 }
  0x5b   :  { %746 = vmatpush3.bf16.msra.mxu0 %v582_v9 }
  0x5c   :  { %747 = vmatprep.subr.bf16.mxu0 %v803_v6 }
  0x5f   :  { %748 = vmatpush3.bf16.msra.mxu0 %v583_v12 }
  0x60   :  { %749 = vmatprep.subr.bf16.mxu0 %v803_v6 }
  0x63   :  { %750 = vmatpush3.bf16.msra.mxu0 %v584_v15 }
  0x64   :  { %751 = vmatprep.subr.bf16.mxu0 %v803_v6 }
  0x67   :  { %752 = vmatpush3.bf16.msra.mxu0 %v585_v19 }
  0x68   :  { %753 = vmatprep.subr.bf16.mxu0 %v803_v6 }
  0x6b   :  { %754 = vmatpush3.bf16.msra.mxu0 %v586_v22 }
  0x6c   :  { %755 = vmatprep.subr.bf16.mxu0 %v803_v6 }
  0x6f   :  { %756 = vmatpush3.bf16.msra.mxu0 %v587_v25 }
  0x70   :  { %757 = vmatprep.subr.bf16.mxu0 %v803_v6 }
  0x73   :  { %758 = vmatpush3.bf16.msra.mxu0 %v588_v28 }
 0x109   :  { %v662_v29 = vpop.f32.mrb[0].mxu0 }
 0x10a   :  { %v684_v30 = vpop.f32.mrb[0].mxu1  ;;  %v663_v32 = vpop.f32.mrb[1].mxu0 }
 0x10b   :  { %v664_v17 = vadd.f32 %v663_v32, %v662_v29  ;;  %v685_v33 = vpop.f32.mrb[1].mxu1  ;;  %v665_v34 = vpop.f32.mrb[2].mxu0 }
 0x10c   :  { %v686_v35 = vadd.f32 %v685_v33, %v684_v30  ;;  %v687_v36 = vpop.f32.mrb[2].mxu1  ;;  %v666_v37 = vpop.f32.mrb[3].mxu0 }
 0x10d   :  { %v439_v38 = vadd.f32 %v664_v17, %v644_v31  ;;  %v688_v39 = vpop.f32.mrb[3].mxu1 }
 0x10f   :  { %v479_v40 = vadd.f32 %v686_v35, %v439_v38 }
 0x129   :  { %v706_v41 = vpop.f32.mrb[4].mxu0 }
 0x12a   :  { %v728_v42 = vpop.f32.mrb[4].mxu1  ;;  %v707_v43 = vpop.f32.mrb[5].mxu0 }
 0x12b   :  { %v708_v44 = vadd.f32 %v707_v43, %v706_v41  ;;  %v729_v45 = vpop.f32.mrb[5].mxu1  ;;  %v709_v46 = vpop.f32.mrb[6].mxu0 }
 0x12c   :  { %v730_v47 = vadd.f32 %v729_v45, %v728_v42  ;;  %v731_v48 = vpop.f32.mrb[6].mxu1  ;;  %v710_v49 = vpop.f32.mrb[7].mxu0 }
 0x12d   :  { %v519_v50 = vadd.f32 %v708_v44, %v479_v40  ;;  %v732_v51 = vpop.f32.mrb[7].mxu1 }
 0x12f   :  { %v559_v52 = vadd.f32 %v730_v47, %v519_v50 }
 0x131   :  { %v564_v53 = vmax.f32 %v559_v52, 0.0 }
 0x133   :  { %v589_v54 = vpack.c.bf16 %v564_v53, %v564_v53 }
 0x135   :  { %760 = vmatmul.mubr.bf16.vlgmr.msra.gmra.mrb[8].mxu0 %v589_v54 }
 0x208   :  { %v631_v56 = vpop.f32.mrb[8].mxu0 }
 0x209   :  { %v632_v57 = vadd.f32 %v645_v55, %v631_v56  ;;  %v761_v58 = vpop.f32.mrb[9].mxu0 }
 0x20a   :  { %v634_v59 = vpop.f32.mrb[10].mxu0 }
 0x20b   :  { %638 = vst.msk [vmem:[%s989_s7] sm:$0x3f] %vm637_vm3, %v632_v57  ;;  %v762_v61 = vpop.f32.mrb[11].mxu0 }
 0x20c   :  { %643 = vsyncpa [#allocation3], 1 }

</bundles_post_ra>
